<compile_context>
chip_gen: v5e
topology: v5e:2x2
jax: 0.10.0
libtpu: 0.0.40
codegen_flags: <defaults>
</compile_context>

<pallas_src>
import math
from functools import partial

import jax
import jax.numpy as jnp
from jax.experimental import pallas as pl
from jax.experimental.pallas import tpu as pltpu


def _round_up(n, m):
    return ((n + m - 1) // m) * m


# --------------------------------------------------------------------------
# Kernel
# --------------------------------------------------------------------------
def _encoder_kernel(n_hidden, *refs):
    """refs layout: [x, (W_h, b_h) * n_hidden, W_head, b_head, out_fused]."""
    x_ref = refs[0]
    h = x_ref[...].astype(jnp.bfloat16)               # in-kernel f32 -> bf16 cast
    idx = 1
    for _ in range(n_hidden):
        w_ref, b_ref = refs[idx], refs[idx + 1]
        idx += 2
        acc = jnp.dot(h, w_ref[...], preferred_element_type=jnp.float32)
        acc = acc + b_ref[...]                        # f32 bias add
        h = jnp.maximum(acc, 0.0).astype(jnp.bfloat16)
    w_head, b_head, out_ref = refs[idx], refs[idx + 1], refs[idx + 2]
    acc = jnp.dot(h, w_head[...], preferred_element_type=jnp.float32) + b_head[...]
    out_ref[...] = acc.astype(out_ref.dtype)          # single lane-dense store


# --------------------------------------------------------------------------
# Parameter preparation (done once, not per call)
# --------------------------------------------------------------------------
def init_linear(key, din, dout):
    """Mirrors nn.Linear init U(-1/sqrt(din), 1/sqrt(din)); W stored [in,out]."""
    kw, kb = jax.random.split(key)
    bound = 1.0 / math.sqrt(din)
    w = jax.random.uniform(kw, (din, dout), jnp.float32, -bound, bound)
    b = jax.random.uniform(kb, (1, dout), jnp.float32, -bound, bound)
    return w, b


def make_encoder_params(key, din, dout, rotations, scaling):
    if rotations and scaling:
        dims = [din, 98, 12, 12]
    else:
        dims = [din, 500, 200]
    keys = jax.random.split(key, len(dims) + 1)
    hidden = [init_linear(keys[i], dims[i], dims[i + 1]) for i in range(len(dims) - 1)]
    mean = init_linear(keys[-2], dims[-1], dout)
    logsigma = init_linear(keys[-1], dims[-1], dout)
    return {"hidden": hidden, "mean": mean, "logsigma": logsigma}


def prepare_encoder_params(params, dout):
    """Pad lane dims to 128 multiples, fuse the two heads, cast W to bf16.

    NOTE: weights are cast to bfloat16 (f32 accumulation in-kernel).  This is a
    deliberate precision trade-off vs. the original float32 nn.Linear; it is
    fine for a VAE encoder but slightly perturbs logsigma.
    """
    hidden = []
    prev_pad = params["hidden"][0][0].shape[0]        # Din stays unpadded
    for (w, b) in params["hidden"]:
        din_l, dout_l = w.shape
        out_pad = _round_up(dout_l, 128)              # keep 128-lane padding (not 256)
        w_p = jnp.zeros((prev_pad, out_pad), jnp.bfloat16)
        w_p = w_p.at[:din_l, :dout_l].set(w.astype(jnp.bfloat16))
        b_p = jnp.zeros((1, out_pad), jnp.float32).at[:, :dout_l].set(b)
        hidden.append((w_p, b_p))
        prev_pad = out_pad

    wm, bm = params["mean"]
    wl, bl = params["logsigma"]
    h_last = wm.shape[0]
    fused_out = 2 * dout
    fused_pad = _round_up(fused_out, 128)
    w_head = jnp.zeros((prev_pad, fused_pad), jnp.bfloat16)
    w_head = w_head.at[:h_last, :dout].set(wm.astype(jnp.bfloat16))
    w_head = w_head.at[:h_last, dout:fused_out].set(wl.astype(jnp.bfloat16))
    b_head = jnp.zeros((1, fused_pad), jnp.float32)
    b_head = b_head.at[:, :dout].set(bm)
    b_head = b_head.at[:, dout:fused_out].set(bl)

    return {"hidden": hidden, "head": (w_head, b_head),
            "dout": dout, "fused_pad": fused_pad}


# --------------------------------------------------------------------------
# Batch tiling: balanced tiles, minimal pad waste, >=2 steps for v7x dual-TC
# --------------------------------------------------------------------------
def _choose_batch_tiling(batch, batch_tile):
    num_tiles = pl.cdiv(batch, batch_tile)
    if batch > 256:
        # v7x has 2 TensorCores; give the "parallel" grid axis >= 2 steps so
        # both cores get work.  On single-TC v5e/v6e an extra step only costs
        # ~0.35 us, which is negligible at this size.
        num_tiles = max(num_tiles, 2)
    b_tile = _round_up(pl.cdiv(batch, num_tiles), 8)
    b_pad = _round_up(batch, b_tile)
    return b_tile, b_pad, b_pad // b_tile


# --------------------------------------------------------------------------
# Forward pass
# --------------------------------------------------------------------------
def encoder_forward(x, pp, batch_tile=1024, out_dtype=jnp.bfloat16):
    """Runs the Encoder forward as one batch-gridded Pallas call.

    Returns (mean, logsigma) with nn.Linear semantics (y = x @ W.T + b).
    """
    B, din = x.shape
    dout = pp["dout"]
    fused_pad = pp["fused_pad"]
    n_hidden = len(pp["hidden"])

    b_tile, b_pad, n_steps = _choose_batch_tiling(B, batch_tile)

    # Only pad the batch when actually required (keeps the B=8 fast path free
    # of extra XLA ops); the f32->bf16 cast is done inside the kernel.
    x_p = x if b_pad == B else jnp.pad(x, ((0, b_pad - B), (0, 0)))

    operands = [x_p]
    for w, b in pp["hidden"]:
        operands += [w, b]
    operands += [pp["head"][0], pp["head"][1]]

    grid = (n_steps,)
    in_specs = [pl.BlockSpec((b_tile, din), lambda i: (i, 0))]
    for op in operands[1:]:
        # Constant index_map -> weights/biases stay VMEM-resident across steps.
        in_specs.append(pl.BlockSpec(op.shape, lambda i: (0, 0)))
    out_specs = pl.BlockSpec((b_tile, fused_pad), lambda i: (i, 0))
    out_shape = jax.ShapeDtypeStruct((b_pad, fused_pad), out_dtype)

    flops = 0
    for w, _ in pp["hidden"]:
        flops += 2 * b_pad * w.shape[0] * w.shape[1]
    flops += 2 * b_pad * pp["head"][0].shape[0] * pp["head"][0].shape[1]
    bytes_accessed = (x_p.size * x_p.dtype.itemsize
                      + b_pad * fused_pad * jnp.dtype(out_dtype).itemsize)
    for op in operands[1:]:
        bytes_accessed += op.size * op.dtype.itemsize

    fused = pl.pallas_call(
        partial(_encoder_kernel, n_hidden),
        grid=grid,
        in_specs=in_specs,
        out_specs=out_specs,
        out_shape=out_shape,
        compiler_params=pltpu.CompilerParams(
            dimension_semantics=("parallel",)),
        cost_estimate=pl.CostEstimate(
            flops=flops, transcendentals=0, bytes_accessed=bytes_accessed),
    )(*operands)

    if b_pad != B:
        fused = fused[:B]
    mean = fused[:, :dout]
    logsigma = fused[:, dout:2 * dout]
    return mean, logsigma


# --------------------------------------------------------------------------
# Pure-JAX reference (same bf16-weights / f32-accumulation numerics)
# --------------------------------------------------------------------------
def encoder_reference(x, params):
    h = x.astype(jnp.bfloat16)
    for w, b in params["hidden"]:
        a = jnp.dot(h, w.astype(jnp.bfloat16),
                    preferred_element_type=jnp.float32) + b
        h = jnp.maximum(a, 0.0).astype(jnp.bfloat16)
    wm, bm = params["mean"]
    wl, bl = params["logsigma"]
    mean = jnp.dot(h, wm.astype(jnp.bfloat16),
                   preferred_element_type=jnp.float32) + bm
    logsigma = jnp.dot(h, wl.astype(jnp.bfloat16),
                       preferred_element_type=jnp.float32) + bl
    return mean, logsigma


if __name__ == "__main__":
    key = jax.random.PRNGKey(0)
    kx, kx2, kp1, kp2 = jax.random.split(key, 4)

    Din, Dout = 32, 8
    ok = True

    def check(a, b):
        # bf16 output store adds <=0.4% relative rounding on top of the shared
        # bf16-weight / f32-accumulate numerics.
        return bool(jnp.allclose(jnp.asarray(a, jnp.float32),
                                 jnp.asarray(b, jnp.float32),
                                 atol=2e-2, rtol=2e-2))

    x = jax.random.normal(kx, (8, Din), jnp.float32)

    # Config 1: rotations=False, scaling=False -> Din->500->200->(Dout, Dout)
    params1 = make_encoder_params(kp1, Din, Dout, rotations=False, scaling=False)
    pp1 = prepare_encoder_params(params1, Dout)
    mean, logsigma = encoder_forward(x, pp1)
    jax.block_until_ready((mean, logsigma))
    mr, lr = encoder_reference(x, params1)
    ok &= check(mean, mr) and check(logsigma, lr)

    # Config 2: rotations=True, scaling=True -> Din->98->12->12->(Dout, Dout)
    params2 = make_encoder_params(kp2, Din, Dout, rotations=True, scaling=True)
    pp2 = prepare_encoder_params(params2, Dout)
    mean2, logsigma2 = encoder_forward(x, pp2)
    jax.block_until_ready((mean2, logsigma2))
    mr2, lr2 = encoder_reference(x, params2)
    ok &= check(mean2, mr2) and check(logsigma2, lr2)

    # Larger, non-multiple batch: exercises balanced tiling (2 x 304 rows,
    # only 8 padded rows) and the 2-step parallel grid.
    xb = jax.random.normal(kx2, (600, Din), jnp.float32)
    mean3, logsigma3 = encoder_forward(xb, pp1)
    jax.block_until_ready((mean3, logsigma3))
    mr3, lr3 = encoder_reference(xb, params1)
    ok &= check(mean3, mr3) and check(logsigma3, lr3)

    print("KERNEL_OK" if ok else "KERNEL_MISMATCH")
</pallas_src>

<mosaic_0001>
module attributes {stable_mosaic.version = 11 : i64} {
  func.func @_encoder_kernel(%arg0: i32, %arg1: memref<8x32xf32, #tpu.memory_space<vmem>>, %arg2: memref<32x512xbf16, #tpu.memory_space<vmem>>, %arg3: memref<1x512xf32, #tpu.memory_space<vmem>>, %arg4: memref<512x256xbf16, #tpu.memory_space<vmem>>, %arg5: memref<1x256xf32, #tpu.memory_space<vmem>>, %arg6: memref<256x128xbf16, #tpu.memory_space<vmem>>, %arg7: memref<1x128xf32, #tpu.memory_space<vmem>>, %arg8: memref<8x128xbf16, #tpu.memory_space<vmem>>) attributes {dimension_semantics = [#tpu.dimension_semantics<parallel>], iteration_bounds = array<i64: 1>, scalar_prefetch = 0 : i64, scratch_operands = 0 : i64, tpu.core_type = #tpu.core_type<tc>, window_params = [{transform_indices = @transform_0, window_bounds = array<i64: 8, 32>}, {pipeline_mode = #tpu.pipeline_mode<synchronous>, transform_indices = @transform_1, window_bounds = array<i64: 32, 512>}, {pipeline_mode = #tpu.pipeline_mode<synchronous>, transform_indices = @transform_2, window_bounds = array<i64: 1, 512>}, {pipeline_mode = #tpu.pipeline_mode<synchronous>, transform_indices = @transform_3, window_bounds = array<i64: 512, 256>}, {pipeline_mode = #tpu.pipeline_mode<synchronous>, transform_indices = @transform_4, window_bounds = array<i64: 1, 256>}, {pipeline_mode = #tpu.pipeline_mode<synchronous>, transform_indices = @transform_5, window_bounds = array<i64: 256, 128>}, {pipeline_mode = #tpu.pipeline_mode<synchronous>, transform_indices = @transform_6, window_bounds = array<i64: 1, 128>}, {transform_indices = @transform_7, window_bounds = array<i64: 8, 128>}]} {
    %c0 = arith.constant 0 : index
    %c0_0 = arith.constant 0 : index
    %0 = vector.load %arg1[%c0, %c0_0] : memref<8x32xf32, #tpu.memory_space<vmem>>, vector<8x32xf32>
    %1 = arith.truncf %0 : vector<8x32xf32> to vector<8x32xbf16>
    %c0_1 = arith.constant 0 : index
    %c0_2 = arith.constant 0 : index
    %2 = vector.load %arg2[%c0_1, %c0_2] : memref<32x512xbf16, #tpu.memory_space<vmem>>, vector<32x512xbf16>
    %cst = arith.constant dense<0.000000e+00> : vector<8x512xf32>
    %3 = tpu.matmul %1, %2, %cst {dimension_numbers = #tpu.dot_dimension_numbers<[1], [0], [0], [1], [0, 0, 1, 1], [], []>} : vector<8x32xbf16>, vector<32x512xbf16>, vector<8x512xf32> -> vector<8x512xf32>
    %c0_3 = arith.constant 0 : index
    %c0_4 = arith.constant 0 : index
    %4 = vector.load %arg3[%c0_3, %c0_4] : memref<1x512xf32, #tpu.memory_space<vmem>>, vector<1x512xf32>
    %5 = vector.broadcast %4 : vector<1x512xf32> to vector<8x512xf32>
    %6 = arith.addf %3, %5 : vector<8x512xf32>
    %cst_5 = arith.constant 0.000000e+00 : f32
    %7 = vector.broadcast %cst_5 : f32 to vector<8x512xf32>
    %8 = arith.maximumf %6, %7 : vector<8x512xf32>
    %9 = arith.truncf %8 : vector<8x512xf32> to vector<8x512xbf16>
    %c0_6 = arith.constant 0 : index
    %c0_7 = arith.constant 0 : index
    %10 = vector.load %arg4[%c0_6, %c0_7] : memref<512x256xbf16, #tpu.memory_space<vmem>>, vector<512x256xbf16>
    %cst_8 = arith.constant dense<0.000000e+00> : vector<8x256xf32>
    %11 = tpu.matmul %9, %10, %cst_8 {dimension_numbers = #tpu.dot_dimension_numbers<[1], [0], [0], [1], [0, 0, 1, 1], [], []>} : vector<8x512xbf16>, vector<512x256xbf16>, vector<8x256xf32> -> vector<8x256xf32>
    %c0_9 = arith.constant 0 : index
    %c0_10 = arith.constant 0 : index
    %12 = vector.load %arg5[%c0_9, %c0_10] : memref<1x256xf32, #tpu.memory_space<vmem>>, vector<1x256xf32>
    %13 = vector.broadcast %12 : vector<1x256xf32> to vector<8x256xf32>
    %14 = arith.addf %11, %13 : vector<8x256xf32>
    %cst_11 = arith.constant 0.000000e+00 : f32
    %15 = vector.broadcast %cst_11 : f32 to vector<8x256xf32>
    %16 = arith.maximumf %14, %15 : vector<8x256xf32>
    %17 = arith.truncf %16 : vector<8x256xf32> to vector<8x256xbf16>
    %c0_12 = arith.constant 0 : index
    %c0_13 = arith.constant 0 : index
    %18 = vector.load %arg6[%c0_12, %c0_13] : memref<256x128xbf16, #tpu.memory_space<vmem>>, vector<256x128xbf16>
    %cst_14 = arith.constant dense<0.000000e+00> : vector<8x128xf32>
    %19 = tpu.matmul %17, %18, %cst_14 {dimension_numbers = #tpu.dot_dimension_numbers<[1], [0], [0], [1], [0, 0, 1, 1], [], []>} : vector<8x256xbf16>, vector<256x128xbf16>, vector<8x128xf32> -> vector<8x128xf32>
    %c0_15 = arith.constant 0 : index
    %c0_16 = arith.constant 0 : index
    %20 = vector.load %arg7[%c0_15, %c0_16] : memref<1x128xf32, #tpu.memory_space<vmem>>, vector<1x128xf32>
    %21 = vector.broadcast %20 : vector<1x128xf32> to vector<8x128xf32>
    %22 = arith.addf %19, %21 : vector<8x128xf32>
    %23 = arith.truncf %22 : vector<8x128xf32> to vector<8x128xbf16>
    %c0_17 = arith.constant 0 : index
    %c0_18 = arith.constant 0 : index
    %24 = vector.load %arg8[%c0_17, %c0_18] : memref<8x128xbf16, #tpu.memory_space<vmem>>, vector<8x128xbf16>
    tpu.vector_store %arg8[%c0_17, %c0_18], %23 {strides = array<i32>} : memref<8x128xbf16, #tpu.memory_space<vmem>>, vector<8x128xbf16>,
    return
  }
  func.func @transform_0(%arg0: i32) -> (i32, i32) {
    %c0_i32 = arith.constant 0 : i32
    %c0_i32_0 = arith.constant 0 : i32
    return %arg0, %c0_i32 : i32, i32
  }
  func.func @transform_1(%arg0: i32) -> (i32, i32) {
    %c0_i32 = arith.constant 0 : i32
    %c0_i32_0 = arith.constant 0 : i32
    %c0_i32_1 = arith.constant 0 : i32
    return %c0_i32, %c0_i32_0 : i32, i32
  }
  func.func @transform_2(%arg0: i32) -> (i32, i32) {
    %c0_i32 = arith.constant 0 : i32
    %c0_i32_0 = arith.constant 0 : i32
    %c0_i32_1 = arith.constant 0 : i32
    return %c0_i32, %c0_i32_0 : i32, i32
  }
  func.func @transform_3(%arg0: i32) -> (i32, i32) {
    %c0_i32 = arith.constant 0 : i32
    %c0_i32_0 = arith.constant 0 : i32
    %c0_i32_1 = arith.constant 0 : i32
    return %c0_i32, %c0_i32_0 : i32, i32
  }
  func.func @transform_4(%arg0: i32) -> (i32, i32) {
    %c0_i32 = arith.constant 0 : i32
    %c0_i32_0 = arith.constant 0 : i32
    %c0_i32_1 = arith.constant 0 : i32
    return %c0_i32, %c0_i32_0 : i32, i32
  }
  func.func @transform_5(%arg0: i32) -> (i32, i32) {
    %c0_i32 = arith.constant 0 : i32
    %c0_i32_0 = arith.constant 0 : i32
    %c0_i32_1 = arith.constant 0 : i32
    return %c0_i32, %c0_i32_0 : i32, i32
  }
  func.func @transform_6(%arg0: i32) -> (i32, i32) {
    %c0_i32 = arith.constant 0 : i32
    %c0_i32_0 = arith.constant 0 : i32
    %c0_i32_1 = arith.constant 0 : i32
    return %c0_i32, %c0_i32_0 : i32, i32
  }
  func.func @transform_7(%arg0: i32) -> (i32, i32) {
    %c0_i32 = arith.constant 0 : i32
    %c0_i32_0 = arith.constant 0 : i32
    return %arg0, %c0_i32 : i32, i32
  }
}

</mosaic_0001>

<bundles_post_ra>
// kernel: tpu_custom_call.1
= control target key start
LH: loop header
LB: loop body
LE: loop exit
PB: predicated region body
PF: predicated region fallthrough
CT: control target
= control target key end

     0   :  { %12 = vsyncpa [#allocation3], 0  ;;  %s1598_s0 = inlined_call_operand.hbm [shape: f32[8,32], index: 0, kind: input, shape index: {}]   ;;  %s1599_s1 = inlined_call_operand.hbm [shape: bf16[32,512], index: 1, kind: input, shape index: {}]   ;;  %s1600_s2 = inlined_call_operand.hbm [shape: f32[1,512], index: 2, kind: input, shape index: {}]   ;;  %s1601_s3 = inlined_call_operand.hbm [shape: bf16[512,256], index: 3, kind: input, shape index: {}]   ;;  %s1602_s4 = inlined_call_operand.vmem [shape: f32[1,256], index: 4, kind: input, shape index: {}]   ;;  %s1603_s5 = inlined_call_operand.hbm [shape: bf16[256,128], index: 5, kind: input, shape index: {}]   ;;  %s1604_s6 = inlined_call_operand.vmem [shape: f32[1,128], index: 6, kind: input, shape index: {}]   ;;  %s1605_s7 = inlined_call_operand.hbm [shape: bf16[8,128], index: 7, kind: output, shape index: {}]  }
   0x1   :  { %13 = vsyncpa [#allocation6], 0 }
   0x2   :  { %14 = vsyncpa [#allocation9], 0  ;;  %s31_s26 = sshll.u32 %s1599_s1, 4  ;;  %s32_s26 = int_to_ptr.hbm [resolvable:$true] %s31_s26 }
   0x3   :  { %15 = vsyncpa [#allocation4], 0  ;;  %s1512_s27 = smov [#allocation5]   ;;  %s55_s8 = sshll.u32 %s1601_s3, 4  ;;  %s56_s8 = int_to_ptr.hbm [resolvable:$true] %s55_s8 }
   0x4   :  { %s33_s28 = sshll.u32 %s1512_s27, 4  ;;  %s1513_s9 = smov 256   ;;  %s34_s28 = int_to_ptr.vmem [resolvable:$true] %s33_s28 }
   0x5   :  { %s1514_s10 = smov 16   ;;  %s1515_s11 = smov [#allocation8]  }
   0x6   :  { %39 = dma.hbm_to_vmem [thread:$0]  %s32_s26, 1024, %s34_s28, [#allocation6], %s1513_s9, %s1513_s9, %s1514_s10  }
   0x7   :  { %s57_s12 = sshll.u32 %s1515_s11, 4  ;;  %s1516_s13 = smov 128   ;;  %s58_s12 = int_to_ptr.vmem [resolvable:$true] %s57_s12 }
   0x8   :  { %s1517_s14 = smov 8   ;;  %s21_s16 = sshll.u32 %s1598_s0, 4  ;;  %s22_s16 = int_to_ptr.hbm [resolvable:$true] %s21_s16 }
   0x9   :  { %63 = dma.hbm_to_vmem [thread:$0]  %s56_s8, 8192, %s58_s12, [#allocation9], %s1516_s13, %s1516_s13, %s1517_s14  }
   0xa   :  { %s1518_s17 = smov [#allocation2]   ;;  %s45_s20 = sshll.u32 %s1600_s2, 4  ;;  %s46_s20 = int_to_ptr.hbm [resolvable:$true] %s45_s20 }
   0xb   :  { %s23_s18 = sshll.u32 %s1518_s17, 4  ;;  %s1519_s21 = smov [#allocation7]   ;;  %s24_s18 = int_to_ptr.vmem [resolvable:$true] %s23_s18 }
   0xc   :  { %26 = dma.hbm_to_vmem [thread:$0]  %s22_s16, 128, %s24_s18, [#allocation3]  }
   0xd   :  { %s47_s22 = sshll.u32 %s1519_s21, 4  ;;  %s70_s25 = sshll.u32 %s1603_s5, 4  ;;  %s48_s22 = int_to_ptr.vmem [resolvable:$true] %s47_s22  ;;  %s71_s25 = int_to_ptr.hbm [resolvable:$true] %s70_s25 }
   0xe   :  { %50 = dma.hbm_to_vmem [thread:$0]  %s46_s20, 64, %s48_s22, [#allocation6]  }
   0xf   :  { %s1520_s0 = smov [#allocation10]   ;;  %s1521_s27 = smov 64  }
  0x10   :  { %s72_s26 = sshll.u32 %s1520_s0, 4  ;;  %s1522_s28 = smov 4   ;;  %s73_s26 = int_to_ptr.vmem [resolvable:$true] %s72_s26 }
  0x11   :  { %78 = dma.hbm_to_vmem [thread:$0]  %s71_s25, 2048, %s73_s26, [#allocation9], %s1521_s27, %s1521_s27, %s1522_s28  }
  0x12   :  { %1504 = dma.done.wait [#allocation3], 128  }
  0x13   :  { %1505 = vsyncadd [#allocation3], 4294967168 }
  0x14   :  { %1506 = dma.done.wait [#allocation6], 1088  }
  0x15   :  { %1507 = vsyncadd [#allocation6], 4294966208 }
  0x16   :  { %1508 = dma.done.wait [#allocation9], 10240  }
  0x17   :  { %1509 = vsyncadd [#allocation9], 4294957056  ;;  %v921_v0 = vld [vmem:[#allocation5 + $0x20] sm:$0xf]  ;;  %v1265_v1 = vld [vmem:[#allocation5 + $0x2c] sm:$0xf0] }
  0x18   :  { %v1263_v2 = vld [vmem:[#allocation5 + $0x24] sm:$0xf]  ;;  %v922_v3 = vor.u32 %v1265_v1, %v921_v0  ;;  %v923_v4 = vld [vmem:[#allocation5 + $0x30] sm:$0xf0]  ;;  %v905_v5 = vld [vmem:[#allocation5] sm:$0xf] }
  0x19   :  { %v1261_v6 = vld [vmem:[#allocation5 + $0xc] sm:$0xf0]  ;;  %v926_v7 = vor.u32 %v1263_v2, %v923_v4  ;;  %v1259_v8 = vld [vmem:[#allocation5 + $0x4] sm:$0xf]  ;;  %v907_v9 = vld [vmem:[#allocation5 + $0x10] sm:$0xf0] }
  0x1a   :  { %v102_v10 = vld [vmem:[#allocation2] sm:$0xff]  ;;  %vm162_vm0 = vcmask 261120   ;;  %172 = vmatpush.bf16.msra.mxu2 %v922_v3  ;;  %v906_v11 = vor.u32 %v1261_v6, %v905_v5  ;;  %v929_v12 = vld [vmem:[#allocation5 + $0x28] sm:$0xf]  ;;  %v1264_v14 = vld [vmem:[#allocation5 + $0x2c] sm:$0xf]  ;;  %v910_v15 = vor.u32 %v1259_v8, %v907_v9 }
  0x1b   :  { %v1266_v13 = vld [vmem:[#allocation5 + $0x34] sm:$0xf0]  ;;  %185 = vmatpush.bf16.msra.mxu3 %v926_v7  ;;  %v931_v17 = vld [vmem:[#allocation5 + $0x38] sm:$0xf0]  ;;  %v913_v18 = vld [vmem:[#allocation5 + $0x8] sm:$0xf]  ;;  %v1579_v24 = vpack.c.bf16 %v102_v10, %v102_v10 }
  0x1c   :  { %v930_v16 = vor.u32 %v1266_v13, %v929_v12  ;;  %v1262_v19 = vld [vmem:[#allocation5 + $0x14] sm:$0xf0]  ;;  %v934_v20 = vor.u32 %v1264_v14, %v931_v17  ;;  %v1260_v21 = vld [vmem:[#allocation5 + $0xc] sm:$0xf]  ;;  %v915_v22 = vld [vmem:[#allocation5 + $0x18] sm:$0xf0] }
  0x1d   :  { %v997_v23 = vld [vmem:[#allocation8 + $0x70] sm:$0xf]  ;;  %v1282_v25 = vld [vmem:[#allocation8 + $0x74] sm:$0xf0]  ;;  %v989_v30 = vld [vmem:[#allocation8 + $0x60] sm:$0xf]  ;;  %v914_v33 = vor.u32 %v1262_v19, %v913_v18  ;;  %v918_v35 = vor.u32 %v1260_v21, %v915_v22 }
  0x1e   :  { %v1061_v26 = vld [vmem:[#allocation8 + $0xf0] sm:$0xf]  ;;  %v1298_v27 = vld [vmem:[#allocation8 + $0xf4] sm:$0xf0]  ;;  %173 = vmatpush.bf16.msra.mxu2 %v906_v11  ;;  %v998_v28 = vor.u32 %v1282_v25, %v997_v23  ;;  %v1280_v31 = vld [vmem:[#allocation8 + $0x64] sm:$0xf0] }
  0x1f   :  { %v1062_v29 = vor.u32 %v1298_v27, %v1061_v26  ;;  %v1053_v32 = vld [vmem:[#allocation8 + $0xe0] sm:$0xf]  ;;  %186 = vmatpush.bf16.msra.mxu3 %v910_v15  ;;  %v1296_v34 = vld [vmem:[#allocation8 + $0xe4] sm:$0xf0]  ;;  %v990_v36 = vor.u32 %v1280_v31, %v989_v30  ;;  %v981_v38 = vld [vmem:[#allocation8 + $0x50] sm:$0xf] }
  0x20   :  { %616 = vmatpush.bf16.msra.mxu0 %v998_v28  ;;  %v1054_v37 = vor.u32 %v1296_v34, %v1053_v32  ;;  %v1278_v39 = vld [vmem:[#allocation8 + $0x54] sm:$0xf0]  ;;  %v1045_v40 = vld [vmem:[#allocation8 + $0xd0] sm:$0xf]  ;;  %v973_v45 = vld [vmem:[#allocation8 + $0x40] sm:$0xf] }
  0x21   :  { %935 = vmatmul.msk.bf16.vlgmr.msra.gmra.mxu2 %vm162_vm0, %v1579_v24  ;;  %629 = vmatpush.bf16.msra.mxu1 %v1062_v29  ;;  %v1294_v41 = vld [vmem:[#allocation8 + $0xd4] sm:$0xf0]  ;;  %v1125_v42 = vld [vmem:[#allocation8 + $0x170] sm:$0xf]  ;;  %v982_v44 = vor.u32 %v1278_v39, %v981_v38  ;;  %v1276_v50 = vld [vmem:[#allocation8 + $0x44] sm:$0xf0] }
  0x22   :  { %198 = vmatpush.bf16.msrb.mxu2 %v930_v16  ;;  %936 = vmatmul.msk.bf16.vlgmr.msra.gmra.mxu3 %vm162_vm0, %v1579_v24  ;;  %v1314_v43 = vld [vmem:[#allocation8 + $0x174] sm:$0xf0]  ;;  %v1189_v47 = vld [vmem:[#allocation8 + $0x1f0] sm:$0xf]  ;;  %v1046_v49 = vor.u32 %v1294_v41, %v1045_v40  ;;  %v1037_v51 = vld [vmem:[#allocation8 + $0xc0] sm:$0xf]  ;;  %v974_v59 = vor.u32 %v1276_v50, %v973_v45 }
  0x23   :  { %211 = vmatpush.bf16.msrb.mxu3 %v934_v20  ;;  %v1126_v46 = vor.u32 %v1314_v43, %v1125_v42  ;;  %v1330_v48 = vld [vmem:[#allocation8 + $0x1f4] sm:$0xf0]  ;;  %v1292_v52 = vld [vmem:[#allocation8 + $0xc4] sm:$0xf0]  ;;  %v1117_v54 = vld [vmem:[#allocation8 + $0x160] sm:$0xf] }
  0x24   :  { %617 = vmatpush.bf16.msra.mxu0 %v990_v36  ;;  %v1190_v53 = vor.u32 %v1330_v48, %v1189_v47  ;;  %v1312_v55 = vld [vmem:[#allocation8 + $0x164] sm:$0xf0]  ;;  %v1181_v56 = vld [vmem:[#allocation8 + $0x1e0] sm:$0xf]  ;;  %v965_v60 = vld [vmem:[#allocation8 + $0x30] sm:$0xf]  ;;  %v1038_v0 = vor.u32 %v1292_v52, %v1037_v51 }
  0x25   :  { %630 = vmatpush.bf16.msra.mxu1 %v1054_v37  ;;  %v1118_v57 = vor.u32 %v1312_v55, %v1117_v54  ;;  %v1328_v58 = vld [vmem:[#allocation8 + $0x1e4] sm:$0xf0]  ;;  %v1274_v61 = vld [vmem:[#allocation8 + $0x34] sm:$0xf0]  ;;  %v1109_v63 = vld [vmem:[#allocation8 + $0x150] sm:$0xf] }
  0x26   :  { %199 = vmatpush.bf16.msrb.mxu2 %v914_v33  ;;  %v1182_v62 = vor.u32 %v1328_v58, %v1181_v56  ;;  %v1310_v1 = vld [vmem:[#allocation8 + $0x154] sm:$0xf0]  ;;  %v1173_v2 = vld [vmem:[#allocation8 + $0x1d0] sm:$0xf]  ;;  %v1101_v8 = vld [vmem:[#allocation8 + $0x140] sm:$0xf]  ;;  %v966_v10 = vor.u32 %v1274_v61, %v965_v60 }
  0x27   :  { %212 = vmatpush.bf16.msrb.mxu3 %v918_v35  ;;  %v1326_v3 = vld [vmem:[#allocation8 + $0x1d4] sm:$0xf0]  ;;  %v1029_v4 = vld [vmem:[#allocation8 + $0xb0] sm:$0xf]  ;;  %v1110_v6 = vor.u32 %v1310_v1, %v1109_v63  ;;  %v1308_v9 = vld [vmem:[#allocation8 + $0x144] sm:$0xf0] }
  0x28   :  { %618 = vmatpush.bf16.msra.mxu0 %v982_v44  ;;  %v1290_v5 = vld [vmem:[#allocation8 + $0xb4] sm:$0xf0]  ;;  %v1174_v7 = vor.u32 %v1326_v3, %v1173_v2  ;;  %v1165_v11 = vld [vmem:[#allocation8 + $0x1c0] sm:$0xf]  ;;  %v1324_v12 = vld [vmem:[#allocation8 + $0x1c4] sm:$0xf0]  ;;  %v1102_v18 = vor.u32 %v1308_v9, %v1101_v8 }
  0x29   :  { %631 = vmatpush.bf16.msra.mxu1 %v1046_v49  ;;  %v1030_v13 = vor.u32 %v1290_v5, %v1029_v4  ;;  %v957_v14 = vld [vmem:[#allocation8 + $0x20] sm:$0xf]  ;;  %v1272_v15 = vld [vmem:[#allocation8 + $0x24] sm:$0xf0]  ;;  %v1166_v19 = vor.u32 %v1324_v12, %v1165_v11  ;;  %v1093_v20 = vld [vmem:[#allocation8 + $0x130] sm:$0xf] }
  0x2a   :  { %642 = vmatpush.bf16.msra.mxu2 %v1126_v46  ;;  %v1021_v16 = vld [vmem:[#allocation8 + $0xa0] sm:$0xf]  ;;  %v1288_v17 = vld [vmem:[#allocation8 + $0xa4] sm:$0xf0]  ;;  %v1306_v21 = vld [vmem:[#allocation8 + $0x134] sm:$0xf0]  ;;  %v958_v22 = vor.u32 %v1272_v15, %v957_v14 }
  0x2b   :  { %655 = vmatpush.bf16.msra.mxu3 %v1190_v53  ;;  %v1157_v23 = vld [vmem:[#allocation8 + $0x1b0] sm:$0xf]  ;;  %v1322_v25 = vld [vmem:[#allocation8 + $0x1b4] sm:$0xf0]  ;;  %v1022_v26 = vor.u32 %v1288_v17, %v1021_v16  ;;  %v1094_v31 = vor.u32 %v1306_v21, %v1093_v20  ;;  %v1085_v33 = vld [vmem:[#allocation8 + $0x120] sm:$0xf] }
  0x2c   :  { %619 = vmatpush.bf16.msra.mxu0 %v974_v59  ;;  %v949_v27 = vld [vmem:[#allocation8 + $0x10] sm:$0xf]  ;;  %v1270_v28 = vld [vmem:[#allocation8 + $0x14] sm:$0xf0]  ;;  %v1158_v32 = vor.u32 %v1322_v25, %v1157_v23  ;;  %v1304_v34 = vld [vmem:[#allocation8 + $0x124] sm:$0xf0] }
  0x2d   :  { %632 = vmatpush.bf16.msra.mxu1 %v1038_v0  ;;  %v1013_v29 = vld [vmem:[#allocation8 + $0x90] sm:$0xf]  ;;  %v1286_v30 = vld [vmem:[#allocation8 + $0x94] sm:$0xf0]  ;;  %v950_v35 = vor.u32 %v1270_v28, %v949_v27  ;;  %v1149_v36 = vld [vmem:[#allocation8 + $0x1a0] sm:$0xf]  ;;  %v1086_v44 = vor.u32 %v1304_v34, %v1085_v33 }
  0x2e   :  { %643 = vmatpush.bf16.msra.mxu2 %v1118_v57  ;;  %v1320_v37 = vld [vmem:[#allocation8 + $0x1a4] sm:$0xf0]  ;;  %v1014_v38 = vor.u32 %v1286_v30, %v1013_v29  ;;  %v941_v39 = vld [vmem:[#allocation8] sm:$0xf]  ;;  %v1281_v43 = vld [vmem:[#allocation8 + $0x74] sm:$0xf] }
  0x2f   :  { %656 = vmatpush.bf16.msra.mxu3 %v1182_v62  ;;  %v1268_v40 = vld [vmem:[#allocation8 + $0x4] sm:$0xf0]  ;;  %v1005_v41 = vld [vmem:[#allocation8 + $0x80] sm:$0xf]  ;;  %v1297_v45 = vld [vmem:[#allocation8 + $0xf4] sm:$0xf]  ;;  %v1150_v47 = vor.u32 %v1320_v37, %v1149_v36 }
  0x30   :  { %620 = vmatpush.bf16.msra.mxu0 %v966_v10  ;;  %v1284_v42 = vld [vmem:[#allocation8 + $0x84] sm:$0xf0]  ;;  %v1063_v46 = vld [vmem:[#allocation8 + $0xf8] sm:$0xf0]  ;;  %v942_v48 = vor.u32 %v1268_v40, %v941_v39  ;;  %v1279_v52 = vld [vmem:[#allocation8 + $0x64] sm:$0xf] }
  0x31   :  { %937 = vmatmul.msk.bf16.vlgmr.msrb.gmra.mxu2 %vm162_vm0, %v1579_v24  ;;  %633 = vmatpush.bf16.msra.mxu1 %v1030_v13  ;;  %v1006_v49 = vor.u32 %v1284_v42, %v1005_v41  ;;  %v1066_v51 = vor.u32 %v1297_v45, %v1063_v46  ;;  %v991_v53 = vld [vmem:[#allocation8 + $0x68] sm:$0xf0]  ;;  %v1295_v54 = vld [vmem:[#allocation8 + $0xe4] sm:$0xf]  ;;  %v1277_v58 = vld [vmem:[#allocation8 + $0x54] sm:$0xf] }
  0x32   :  { %644 = vmatpush.bf16.msra.mxu2 %v1110_v6  ;;  %938 = vmatmul.msk.bf16.vlgmr.msrb.gmra.mxu3 %vm162_vm0, %v1579_v24  ;;  %v999_v24 = vld [vmem:[#allocation8 + $0x78] sm:$0xf0]  ;;  %v1055_v55 = vld [vmem:[#allocation8 + $0xe8] sm:$0xf0]  ;;  %v994_v56 = vor.u32 %v1279_v52, %v991_v53  ;;  %v1293_v60 = vld [vmem:[#allocation8 + $0xd4] sm:$0xf] }
  0x33   :  { %657 = vmatpush.bf16.msra.mxu3 %v1174_v7  ;;  %v1002_v50 = vor.u32 %v1281_v43, %v999_v24  ;;  %v1058_v57 = vor.u32 %v1295_v54, %v1055_v55  ;;  %v983_v59 = vld [vmem:[#allocation8 + $0x58] sm:$0xf0]  ;;  %v1077_v0 = vld [vmem:[#allocation8 + $0x110] sm:$0xf]  ;;  %v1302_v1 = vld [vmem:[#allocation8 + $0x114] sm:$0xf0] }
  0x34   :  { %621 = vmatpush.bf16.msra.mxu0 %v958_v22  ;;  %v986_v61 = vor.u32 %v1277_v58, %v983_v59  ;;  %v1047_v62 = vld [vmem:[#allocation8 + $0xd8] sm:$0xf0]  ;;  %v1141_v2 = vld [vmem:[#allocation8 + $0x190] sm:$0xf]  ;;  %v1078_v3 = vor.u32 %v1302_v1, %v1077_v0  ;;  %v1318_v4 = vld [vmem:[#allocation8 + $0x194] sm:$0xf0] }
  0x35   :  { %634 = vmatpush.bf16.msra.mxu1 %v1022_v26  ;;  %v1050_v63 = vor.u32 %v1293_v60, %v1047_v62  ;;  %v1275_v5 = vld [vmem:[#allocation8 + $0x44] sm:$0xf]  ;;  %v975_v6 = vld [vmem:[#allocation8 + $0x48] sm:$0xf0]  ;;  %v1142_v7 = vor.u32 %v1318_v4, %v1141_v2  ;;  %v1069_v12 = vld [vmem:[#allocation8 + $0x100] sm:$0xf] }
  0x36   :  { %645 = vmatpush.bf16.msra.mxu2 %v1102_v18  ;;  %v978_v8 = vor.u32 %v1275_v5, %v975_v6  ;;  %v1291_v9 = vld [vmem:[#allocation8 + $0xc4] sm:$0xf]  ;;  %v1039_v10 = vld [vmem:[#allocation8 + $0xc8] sm:$0xf0]  ;;  %v1300_v13 = vld [vmem:[#allocation8 + $0x104] sm:$0xf0] }
  0x37   :  { %658 = vmatpush.bf16.msra.mxu3 %v1166_v19  ;;  %v1042_v11 = vor.u32 %v1291_v9, %v1039_v10  ;;  %v1133_v14 = vld [vmem:[#allocation8 + $0x180] sm:$0xf]  ;;  %v1070_v15 = vor.u32 %v1300_v13, %v1069_v12  ;;  %v1316_v16 = vld [vmem:[#allocation8 + $0x184] sm:$0xf0]  ;;  %v1273_v17 = vld [vmem:[#allocation8 + $0x34] sm:$0xf] }
  0x38   :  { %622 = vmatpush.bf16.msra.mxu0 %v950_v35  ;;  %v967_v18 = vld [vmem:[#allocation8 + $0x38] sm:$0xf0]  ;;  %v1134_v19 = vor.u32 %v1316_v16, %v1133_v14  ;;  %v1289_v21 = vld [vmem:[#allocation8 + $0xb4] sm:$0xf]  ;;  %v1287_v33 = vld [vmem:[#allocation8 + $0xa4] sm:$0xf] }
  0x39   :  { %635 = vmatpush.bf16.msra.mxu1 %v1014_v38  ;;  %v970_v20 = vor.u32 %v1273_v17, %v967_v18  ;;  %v1031_v22 = vld [vmem:[#allocation8 + $0xb8] sm:$0xf0]  ;;  %v1313_v23 = vld [vmem:[#allocation8 + $0x174] sm:$0xf]  ;;  %v1023_v35 = vld [vmem:[#allocation8 + $0xa8] sm:$0xf0] }
  0x3a   :  { %646 = vmatpush.bf16.msra.mxu2 %v1094_v31  ;;  %v1034_v25 = vor.u32 %v1289_v21, %v1031_v22  ;;  %v1127_v26 = vld [vmem:[#allocation8 + $0x178] sm:$0xf0]  ;;  %v1329_v27 = vld [vmem:[#allocation8 + $0x1f4] sm:$0xf]  ;;  %v1271_v31 = vld [vmem:[#allocation8 + $0x24] sm:$0xf]  ;;  %v1026_v38 = vor.u32 %v1287_v33, %v1023_v35 }
  0x3b   :  { %659 = vmatpush.bf16.msra.mxu3 %v1158_v32  ;;  %v1191_v28 = vld [vmem:[#allocation8 + $0x1f8] sm:$0xf0]  ;;  %v1130_v29 = vor.u32 %v1313_v23, %v1127_v26  ;;  %v959_v32 = vld [vmem:[#allocation8 + $0x28] sm:$0xf0]  ;;  %v1311_v36 = vld [vmem:[#allocation8 + $0x164] sm:$0xf] }
  0x3c   :  { %623 = vmatpush.bf16.msra.mxu0 %v942_v48  ;;  %v1194_v30 = vor.u32 %v1329_v27, %v1191_v28  ;;  %v962_v34 = vor.u32 %v1271_v31, %v959_v32  ;;  %v1119_v37 = vld [vmem:[#allocation8 + $0x168] sm:$0xf0]  ;;  %v1327_v40 = vld [vmem:[#allocation8 + $0x1e4] sm:$0xf]  ;;  %v1269_v43 = vld [vmem:[#allocation8 + $0x14] sm:$0xf] }
  0x3d   :  { %636 = vmatpush.bf16.msra.mxu1 %v1006_v49  ;;  %v1122_v39 = vor.u32 %v1311_v36, %v1119_v37  ;;  %v1183_v41 = vld [vmem:[#allocation8 + $0x1e8] sm:$0xf0]  ;;  %v951_v24 = vld [vmem:[#allocation8 + $0x18] sm:$0xf0]  ;;  %v1267_v54 = vld [vmem:[#allocation8 + $0x4] sm:$0xf] }
  0x3e   :  { %647 = vmatpush.bf16.msra.mxu2 %v1086_v44  ;;  %v1186_v42 = vor.u32 %v1327_v40, %v1183_v41  ;;  %v1285_v44 = vld [vmem:[#allocation8 + $0x94] sm:$0xf]  ;;  %v954_v45 = vor.u32 %v1269_v43, %v951_v24  ;;  %v1015_v46 = vld [vmem:[#allocation8 + $0x98] sm:$0xf0]  ;;  %v943_v55 = vld [vmem:[#allocation8 + $0x8] sm:$0xf0] }
  0x3f   :  { %660 = vmatpush.bf16.msra.mxu3 %v1150_v47  ;;  %v1309_v47 = vld [vmem:[#allocation8 + $0x154] sm:$0xf]  ;;  %v1111_v48 = vld [vmem:[#allocation8 + $0x158] sm:$0xf0]  ;;  %v1018_v49 = vor.u32 %v1285_v44, %v1015_v46  ;;  %v1007_v58 = vld [vmem:[#allocation8 + $0x88] sm:$0xf0] }
  0x40   :  { %668 = vmatpush.bf16.msrb.mxu0 %v1002_v50  ;;  %v1114_v50 = vor.u32 %v1309_v47, %v1111_v48  ;;  %v1175_v52 = vld [vmem:[#allocation8 + $0x1d8] sm:$0xf0]  ;;  %v1307_v59 = vld [vmem:[#allocation8 + $0x144] sm:$0xf]  ;;  %v1103_v60 = vld [vmem:[#allocation8 + $0x148] sm:$0xf0] }
  0x41   :  { %681 = vmatpush.bf16.msrb.mxu1 %v1066_v51  ;;  %v1325_v51 = vld [vmem:[#allocation8 + $0x1d4] sm:$0xf]  ;;  %v1106_v62 = vor.u32 %v1307_v59, %v1103_v60  ;;  %v1167_v0 = vld [vmem:[#allocation8 + $0x1c8] sm:$0xf0]  ;;  %v1159_v6 = vld [vmem:[#allocation8 + $0x1b8] sm:$0xf0] }
  0x42   :  { %648 = vmatpush.bf16.msra.mxu2 %v1078_v3  ;;  %v1178_v53 = vor.u32 %v1325_v51, %v1175_v52  ;;  %v1305_v2 = vld [vmem:[#allocation8 + $0x134] sm:$0xf]  ;;  %v1095_v3 = vld [vmem:[#allocation8 + $0x138] sm:$0xf0]  ;;  %v1087_v9 = vld [vmem:[#allocation8 + $0x128] sm:$0xf0] }
  0x43   :  { %661 = vmatpush.bf16.msra.mxu3 %v1142_v7  ;;  %v1321_v4 = vld [vmem:[#allocation8 + $0x1b4] sm:$0xf]  ;;  %v1098_v5 = vor.u32 %v1305_v2, %v1095_v3  ;;  %v1319_v10 = vld [vmem:[#allocation8 + $0x1a4] sm:$0xf]  ;;  %v1151_v12 = vld [vmem:[#allocation8 + $0x1a8] sm:$0xf0] }
  0x44   :  { %669 = vmatpush.bf16.msrb.mxu0 %v994_v56  ;;  %v1283_v56 = vld [vmem:[#allocation8 + $0x84] sm:$0xf]  ;;  %v1162_v7 = vor.u32 %v1321_v4, %v1159_v6  ;;  %v1154_v14 = vor.u32 %v1319_v10, %v1151_v12  ;;  %v1079_v16 = vld [vmem:[#allocation8 + $0x118] sm:$0xf0]  ;;  %v1317_v17 = vld [vmem:[#allocation8 + $0x194] sm:$0xf] }
  0x45   :  { %682 = vmatpush.bf16.msrb.mxu1 %v1058_v57  ;;  %v946_v57 = vor.u32 %v1267_v54, %v943_v55  ;;  %v1143_v18 = vld [vmem:[#allocation8 + $0x198] sm:$0xf0]  ;;  %v1071_v26 = vld [vmem:[#allocation8 + $0x108] sm:$0xf0]  ;;  %v1337_v52 = vld [vmem:[#allocation10 + $0x30] sm:$0xff]  ;;  %s1523_s30 = smov [#allocation11]  }
  0x46   :  { %649 = vmatpush.bf16.msra.mxu2 %v1070_v15  ;;  %v1301_v15 = vld [vmem:[#allocation8 + $0x114] sm:$0xf]  ;;  %v1146_v22 = vor.u32 %v1317_v17, %v1143_v18  ;;  %v1338_v51 = vld [vmem:[#allocation10 + $0x38] sm:$0xff]  ;;  %v1335_v54 = vld [vmem:[#allocation10 + $0x20] sm:$0xff]  ;;  %s889_s8 = sshll.u32 %s1523_s30, 4  ;;  %s891_s11 = sshll.u32 %s1605_s7, 4  ;;  %s890_s8 = int_to_ptr.vmem [resolvable:$true] %s889_s8  ;;  %s892_s11 = int_to_ptr.hbm [resolvable:$true] %s891_s11 }
  0x47   :  { %662 = vmatpush.bf16.msra.mxu3 %v1134_v19  ;;  %v1082_v21 = vor.u32 %v1301_v15, %v1079_v16  ;;  %v1334_v55 = vld [vmem:[#allocation10 + $0x18] sm:$0xff]  ;;  %v1332_v59 = vld [vmem:[#allocation10 + $0x8] sm:$0xff]  ;;  %v1341_v2 = vld [vmem:[#allocation10 + $0x50] sm:$0xff] }
  0x48   :  { %670 = vmatpush.bf16.msrb.mxu0 %v986_v61  ;;  %v1010_v61 = vor.u32 %v1283_v56, %v1007_v58  ;;  %v1346_v56 = vld [vmem:[#allocation10 + $0x78] sm:$0xff]  ;;  %v1345_v58 = vld [vmem:[#allocation10 + $0x70] sm:$0xff]  ;;  %v1344_v60 = vld [vmem:[#allocation10 + $0x68] sm:$0xff] }
  0x49   :  { %683 = vmatpush.bf16.msrb.mxu1 %v1050_v63  ;;  %v1323_v63 = vld [vmem:[#allocation8 + $0x1c4] sm:$0xf]  ;;  %v1340_v3 = vld [vmem:[#allocation10 + $0x48] sm:$0xff]  ;;  %v290_v6 = vld [vmem:[%s1602_s4] sm:$0x3] }
  0x4a   :  { %694 = vmatpush.bf16.msrb.mxu2 %v1130_v29  ;;  %v1170_v1 = vor.u32 %v1323_v63, %v1167_v0  ;;  %v1315_v29 = vld [vmem:[#allocation8 + $0x184] sm:$0xf]  ;;  %v1342_v63 = vld [vmem:[#allocation10 + $0x58] sm:$0xff] }
  0x4b   :  { %707 = vmatpush.bf16.msrb.mxu3 %v1194_v30  ;;  %v1135_v30 = vld [vmem:[#allocation8 + $0x188] sm:$0xf0] }
  0x4c   :  { %671 = vmatpush.bf16.msrb.mxu0 %v978_v8  ;;  %v1303_v8 = vld [vmem:[#allocation8 + $0x124] sm:$0xf]  ;;  %v1138_v35 = vor.u32 %v1315_v29, %v1135_v30 }
  0x4d   :  { %684 = vmatpush.bf16.msrb.mxu1 %v1042_v11  ;;  %v112_v11 = vld [vmem:[#allocation7] sm:$0xf]  ;;  %v1090_v13 = vor.u32 %v1303_v8, %v1087_v9  ;;  %v292_v8 = vperm.slane %v290_v6, 0 }
  0x4e   :  { %695 = vmatpush.bf16.msrb.mxu2 %v1122_v39  ;;  %v114_v19 = vperm.slane %v112_v11, 0  ;;  %v116_v40 = vperm.slane %v112_v11, 2  ;;  %v117_v41 = vperm.slane %v112_v11, 3 }
  0x4f   :  { %708 = vmatpush.bf16.msrb.mxu3 %v1186_v42 }
  0x50   :  { %672 = vmatpush.bf16.msrb.mxu0 %v970_v20  ;;  %v115_v20 = vperm.slane %v112_v11, 1 }
  0x51   :  { %685 = vmatpush.bf16.msrb.mxu1 %v1034_v25  ;;  %v1299_v25 = vld [vmem:[#allocation8 + $0x104] sm:$0xf] }
  0x52   :  { %696 = vmatpush.bf16.msrb.mxu2 %v1114_v50  ;;  %v1074_v33 = vor.u32 %v1299_v25, %v1071_v26 }
  0x53   :  { %709 = vmatpush.bf16.msrb.mxu3 %v1178_v53  ;;  %v1336_v53 = vld [vmem:[#allocation10 + $0x28] sm:$0xff] }
  0x54   :  { %673 = vmatpush.bf16.msrb.mxu0 %v962_v34 }
  0x55   :  { %686 = vmatpush.bf16.msrb.mxu1 %v1026_v38 }
  0x56   :  { %697 = vmatpush.bf16.msrb.mxu2 %v1106_v62  ;;  %v1343_v62 = vld [vmem:[#allocation10 + $0x60] sm:$0xff] }
  0x57   :  { %710 = vmatpush.bf16.msrb.mxu3 %v1170_v1 }
  0x58   :  { %674 = vmatpush.bf16.msrb.mxu0 %v954_v45 }
  0x59   :  { %687 = vmatpush.bf16.msrb.mxu1 %v1018_v49 }
  0x5a   :  { %698 = vmatpush.bf16.msrb.mxu2 %v1098_v5 }
  0x5b   :  { %711 = vmatpush.bf16.msrb.mxu3 %v1162_v7  ;;  %v1339_v7 = vld [vmem:[#allocation10 + $0x40] sm:$0xff] }
  0x5c   :  { %675 = vmatpush.bf16.msrb.mxu0 %v946_v57  ;;  %v1333_v57 = vld [vmem:[#allocation10 + $0x10] sm:$0xff] }
  0x5d   :  { %688 = vmatpush.bf16.msrb.mxu1 %v1010_v61  ;;  %v1331_v61 = vld [vmem:[#allocation10] sm:$0xff] }
  0x5e   :  { %699 = vmatpush.bf16.msrb.mxu2 %v1090_v13 }
  0x5f   :  { %712 = vmatpush.bf16.msrb.mxu3 %v1154_v14 }
  0x62   :  { %700 = vmatpush.bf16.msrb.mxu2 %v1082_v21 }
  0x63   :  { %713 = vmatpush.bf16.msrb.mxu3 %v1146_v22 }
  0x66   :  { %701 = vmatpush.bf16.msrb.mxu2 %v1074_v33 }
  0x67   :  { %714 = vmatpush.bf16.msrb.mxu3 %v1138_v35 }
  0xa4   :  { %v175_v23 = vpop.f32.mrf.mxu2 }
  0xa5   :  { %v176_v27 = vadd.f32 %v175_v23, %v114_v19  ;;  %v188_v28 = vpop.f32.mrf.mxu3 }
  0xa6   :  { %v189_v31 = vadd.f32 %v188_v28, %v115_v20  ;;  %v293_v20 = vperm.slane %v290_v6, 1 }
  0xa7   :  { %v218_v32 = vmax.f32 %v176_v27, 0.0 }
  0xa8   :  { %v219_v34 = vmax.f32 %v189_v31, 0.0 }
  0xa9   :  { %v222_v36 = vpack.c.bf16 %v218_v32, %v218_v32 }
  0xaa   :  { %v223_v37 = vpack.c.bf16 %v219_v34, %v219_v34 }
  0xab   :  { %624 = vmatmul.bf16.vlgmr.msra.gmra.mxu0 %v222_v36 }
  0xac   :  { %637 = vmatmul.bf16.vlgmr.msra.gmra.mxu1 %v223_v37  ;;  %v177_v38 = vpop.f32.mrf.mxu2  ;;  %856 = vmatpush.bf16.msra.mxu0 %v1338_v51 }
  0xad   :  { %v190_v39 = vpop.f32.mrf.mxu3  ;;  %869 = vmatpush.bf16.msra.mxu1 %v1346_v56 }
  0xb0   :  { %857 = vmatpush.bf16.msra.mxu0 %v1337_v52 }
  0xb1   :  { %870 = vmatpush.bf16.msra.mxu1 %v1345_v58 }
  0xb4   :  { %v201_v42 = vpop.f32.mrf.mxu2  ;;  %858 = vmatpush.bf16.msra.mxu0 %v1336_v53 }
  0xb5   :  { %v202_v43 = vadd.f32 %v201_v42, %v116_v40  ;;  %v214_v24 = vpop.f32.mrf.mxu3  ;;  %871 = vmatpush.bf16.msra.mxu1 %v1344_v60 }
  0xb6   :  { %v215_v44 = vadd.f32 %v214_v24, %v117_v41 }
  0xb7   :  { %v220_v45 = vmax.f32 %v202_v43, 0.0 }
  0xb8   :  { %v221_v46 = vmax.f32 %v215_v44, 0.0  ;;  %859 = vmatpush.bf16.msra.mxu0 %v1335_v54 }
  0xb9   :  { %v224_v47 = vpack.c.bf16 %v220_v45, %v220_v45  ;;  %872 = vmatpush.bf16.msra.mxu1 %v1343_v62 }
  0xba   :  { %v225_v48 = vpack.c.bf16 %v221_v46, %v221_v46 }
  0xbb   :  { %650 = vmatmul.bf16.vlgmr.msra.gmra.mxu2 %v224_v47  ;;  %676 = vmatmul.bf16.vlgmr.msrb.gmra.mxu0 %v222_v36 }
  0xbc   :  { %663 = vmatmul.bf16.vlgmr.msra.gmra.mxu3 %v225_v48  ;;  %689 = vmatmul.bf16.vlgmr.msrb.gmra.mxu1 %v223_v37  ;;  %v203_v49 = vpop.f32.mrf.mxu2  ;;  %v1359_v37 = vld [vmem:[%s1604_s6] ss:$0 sm:$0xff] }
  0xbd   :  { %v216_v50 = vpop.f32.mrf.mxu3  ;;  %860 = vmatpush.bf16.msra.mxu0 %v1334_v55  ;;  %873 = vmatpush.bf16.msra.mxu1 %v1342_v63 }
  0xc1   :  { %861 = vmatpush.bf16.msra.mxu0 %v1333_v57  ;;  %874 = vmatpush.bf16.msra.mxu1 %v1341_v2 }
  0xc5   :  { %862 = vmatpush.bf16.msra.mxu0 %v1332_v59  ;;  %875 = vmatpush.bf16.msra.mxu1 %v1340_v3 }
  0xc9   :  { %863 = vmatpush.bf16.msra.mxu0 %v1331_v61  ;;  %876 = vmatpush.bf16.msra.mxu1 %v1339_v7 }
  0xcb   :  { %702 = vmatmul.bf16.vlgmr.msrb.gmra.mxu2 %v224_v47 }
  0xcc   :  { %715 = vmatmul.bf16.vlgmr.msrb.gmra.mxu3 %v225_v48 }
 0x128   :  { %v625_v0 = vpop.f32.mrf.mxu0 }
 0x129   :  { %v638_v1 = vpop.f32.mrf.mxu1  ;;  %v626_v10 = vadd.f32 %v625_v0, %v292_v8 }
 0x12b   :  { %v639_v12 = vadd.f32 %v638_v1, %v626_v10 }
 0x130   :  { %v627_v4 = vpop.f32.mrf.mxu0 }
 0x131   :  { %v640_v5 = vpop.f32.mrf.mxu1 }
 0x138   :  { %v677_v9 = vpop.f32.mrf.mxu0 }
 0x139   :  { %v690_v11 = vpop.f32.mrf.mxu1  ;;  %v678_v25 = vadd.f32 %v677_v9, %v293_v20 }
 0x13b   :  { %v691_v26 = vadd.f32 %v690_v11, %v678_v25 }
 0x13e   :  { %v651_v13 = vpop.f32.mrf.mxu2 }
 0x13f   :  { %v652_v14 = vadd.f32 %v651_v13, %v639_v12  ;;  %v664_v15 = vpop.f32.mrf.mxu3 }
 0x140   :  { %v679_v16 = vpop.f32.mrf.mxu0 }
 0x141   :  { %v665_v17 = vadd.f32 %v664_v15, %v652_v14  ;;  %v692_v18 = vpop.f32.mrf.mxu1 }
 0x143   :  { %v720_v19 = vmax.f32 %v665_v17, 0.0 }
 0x145   :  { %v722_v21 = vpack.c.bf16 %v720_v19, %v720_v19 }
 0x146   :  { %v653_v22 = vpop.f32.mrf.mxu2 }
 0x147   :  { %v666_v23 = vpop.f32.mrf.mxu3  ;;  %864 = vmatmul.bf16.vlgmr.msra.gmra.mxu0 %v722_v21 }
 0x14e   :  { %v703_v27 = vpop.f32.mrf.mxu2 }
 0x14f   :  { %v704_v28 = vadd.f32 %v703_v27, %v691_v26  ;;  %v716_v29 = vpop.f32.mrf.mxu3 }
 0x151   :  { %v717_v30 = vadd.f32 %v716_v29, %v704_v28 }
 0x153   :  { %v721_v31 = vmax.f32 %v717_v30, 0.0 }
 0x155   :  { %v723_v32 = vpack.c.bf16 %v721_v31, %v721_v31 }
 0x156   :  { %v705_v33 = vpop.f32.mrf.mxu2 }
 0x157   :  { %v718_v34 = vpop.f32.mrf.mxu3  ;;  %877 = vmatmul.bf16.vlgmr.msra.gmra.mxu1 %v723_v32 }
 0x1c4   :  { %v865_v35 = vpop.f32.mrf.mxu0 }
 0x1c5   :  { %v866_v38 = vadd.f32 %v1359_v37, %v865_v35 }
 0x1cc   :  { %v867_v36 = vpop.f32.mrf.mxu0 }
 0x1d4   :  { %v878_v39 = vpop.f32.mrf.mxu1 }
 0x1d5   :  { %v879_v40 = vadd.f32 %v878_v39, %v866_v38 }
 0x1d7   :  { %v882_v41 = vpack.c.bf16 %v879_v40, %v879_v40 }
 0x1d9   :  { %883 = vst [vmem:[#allocation11] sm:$0xf] %v882_v41 }
 0x1da   :  { %894 = dma.vmem_to_hbm [thread:$0]  %s890_s8, 64, %s892_s11, [#allocation4]  }
 0x1dc   :  { %v880_v42 = vpop.f32.mrf.mxu1 }
 0x1dd   :  { %1510 = dma.done.wait [#allocation4], 64  }
 0x1de   :  { %1511 = vsyncadd [#allocation4], 4294967232 }
 0x1df   :  { %899 = vsyncpa [#allocation3], 1 }
 0x1e0   :  { %900 = vsyncpa [#allocation6], 1 }
 0x1e1   :  { %901 = vsyncpa [#allocation9], 1 }
 0x1e2   :  { %902 = vsyncpa [#allocation4], 1 }

</bundles_post_ra>
